<compile_context>
chip_gen: v7x
topology: tpu7x:2x2x1
jax: 0.10.0
libtpu: 0.0.40
codegen_flags: <defaults>
</compile_context>

<pallas_src>
import jax
import jax.numpy as jnp
from jax.experimental import pallas as pl
from jax.experimental.pallas import tpu as pltpu


def _round_up(x, m):
    return ((x + m - 1) // m) * m


def _linear_kernel(params_ref, x_ref, o_ref):
    # params_ref: SMEM (4,) f32 = [w0, w1, w2, b]
    # x_ref:      VMEM (3, TR, 128)  features-first, sublane+lane dense
    # o_ref:      VMEM (TR, 128) f32
    w0 = params_ref[0]
    w1 = params_ref[1]
    w2 = params_ref[2]
    b = params_ref[3]
    # Explicit upcast before the FMAs: supports bf16 inputs on all
    # generations (v5e's VPU has no bf16 ALU); compute is fully hidden under
    # the HBM-bound DMA either way.
    x0 = x_ref[0].astype(jnp.float32)
    x1 = x_ref[1].astype(jnp.float32)
    x2 = x_ref[2].astype(jnp.float32)
    o_ref[...] = w0 * x0 + w1 * x1 + w2 * x2 + b


def _default_tile_rows(total_blocks):
    """Pick the number of (·, 128) row-blocks per grid step.

    2048 blocks/step = 256K samples ~= 4 MB of HBM traffic per step (>= ~1 us
    of DMA on every generation) while the double-buffered VMEM working set
    stays ~8 MB (< v5e's 16 MiB scoped default).  For large inputs keep
    >= ~8 grid steps so a v7x megacore gives each TensorCore several
    pipelined steps; never shrink below 256 blocks (32K samples) so the
    ~0.35 us/step grid overhead stays amortized.
    """
    tile = 2048
    eight_way = max(256, (total_blocks // 8) // 8 * 8)
    tile = min(tile, eight_way)
    if tile >= total_blocks:
        return total_blocks  # single step, full-extent block
    return tile


def _forward_padded_soa(x_pad, weight, bias, n_valid, *, tile_rows=None,
                        vmem_limit_bytes=None):
    """x_pad: (3, Np) features-first, Np % 128 == 0.  Returns (n_valid, 1) f32."""
    K, Np = x_pad.shape
    assert K == 3 and Np % 128 == 0
    total_blocks = Np // 128

    # Free row-major view: same bytes, now presented sublane+lane dense.
    x_3d = x_pad.reshape(K, total_blocks, 128)

    params = jnp.concatenate([
        jnp.asarray(weight, jnp.float32).reshape(-1),
        jnp.asarray(bias, jnp.float32).reshape(-1),
    ])  # (4,) -> SMEM

    if tile_rows is None:
        tile_rows = _default_tile_rows(total_blocks)
    else:
        tile_rows = min(int(tile_rows), total_blocks)
        if tile_rows < total_blocks and tile_rows % 8 != 0:
            # (8, 128) block constraint: round up, or fall back to full extent.
            tile_rows = min(_round_up(max(tile_rows, 8), 8), total_blocks)

    grid = (pl.cdiv(total_blocks, tile_rows),)

    # Auto-raise the scoped-VMEM limit only if a user-supplied tile would
    # exceed v5e's conservative 16 MiB default (double-buffered in + out).
    in_bytes = jnp.dtype(x_pad.dtype).itemsize
    working = 2 * (K * tile_rows * 128 * in_bytes + tile_rows * 128 * 4)
    if vmem_limit_bytes is None and working > (12 << 20):
        vmem_limit_bytes = min(working + (4 << 20), 60 << 20)

    out = pl.pallas_call(
        _linear_kernel,
        out_shape=jax.ShapeDtypeStruct((total_blocks, 128), jnp.float32),
        grid=grid,
        in_specs=[
            pl.BlockSpec(memory_space=pltpu.MemorySpace.SMEM),
            pl.BlockSpec((K, tile_rows, 128), lambda i: (0, i, 0)),
        ],
        out_specs=pl.BlockSpec((tile_rows, 128), lambda i: (i, 0)),
        compiler_params=pltpu.CompilerParams(
            dimension_semantics=("parallel",),
            # Let XLA fold the AoS wrapper's transpose/pad into the input DMA
            # instead of a separate HBM read+write pass.
            allow_input_fusion=[False, True],
            vmem_limit_bytes=vmem_limit_bytes,
        ),
    )(params, x_3d)

    # (total_blocks, 128) -> (Np,) is a free view; the [:n_valid] slice is the
    # only post-kernel copy.  Consumers that accept the flat padded layout can
    # take `out` directly and skip it.
    return out.reshape(Np)[:n_valid].reshape(n_valid, 1)


def multivar_reg_forward_soa(x_soa, weight, bias, *, tile_rows=None,
                             vmem_limit_bytes=None):
    """Fast path: x already features-first (3, N) -> (N, 1) f32.  No transpose;
    zero extra HBM passes when N is a multiple of 128."""
    x_soa = jnp.asarray(x_soa)
    K, N = x_soa.shape
    assert K == 3
    Np = _round_up(N, 128)
    x_pad = x_soa if Np == N else jnp.pad(x_soa, ((0, 0), (0, Np - N)))
    return _forward_padded_soa(x_pad, weight, bias, N, tile_rows=tile_rows,
                               vmem_limit_bytes=vmem_limit_bytes)


def multivar_reg_forward(x, weight, bias, *, tile_rows=None,
                         vmem_limit_bytes=None):
    """PyTorch-layout path: x (N, 3) -> (N, 1) f32 (== nn.Linear(3, 1)(x)).

    Does one fused transpose+pad-to-128 into SoA layout; callers that hold
    features-first data should use multivar_reg_forward_soa to skip it.
    """
    x = jnp.asarray(x)
    N, K = x.shape
    weight = jnp.asarray(weight, jnp.float32)
    bias = jnp.asarray(bias, jnp.float32)
    assert K == 3 and weight.shape == (1, 3) and bias.shape == (1,)

    Np = _round_up(N, 128)
    # Only the sample axis is padded (< 128 rows); K=3 stays unpadded so HBM
    # read traffic stays ~12 B/sample.
    x_pad = jnp.zeros((K, Np), x.dtype).at[:, :N].set(x.T)
    return _forward_padded_soa(x_pad, weight, bias, N, tile_rows=tile_rows,
                               vmem_limit_bytes=vmem_limit_bytes)


if __name__ == "__main__":
    key = jax.random.PRNGKey(0)
    k_x, k_w, k_b, k_x2, k_x3, k_x4 = jax.random.split(key, 6)

    # Deterministic parameter init matching nn.Linear(3, 1) default:
    # uniform(-1/sqrt(in_features), 1/sqrt(in_features)).
    in_features, out_features = 3, 1
    bound = 1.0 / jnp.sqrt(jnp.float32(in_features))
    weight = jax.random.uniform(
        k_w, (out_features, in_features), jnp.float32, minval=-bound, maxval=bound
    )
    bias = jax.random.uniform(
        k_b, (out_features,), jnp.float32, minval=-bound, maxval=bound
    )

    # 1) Small AoS batch (8, 3): single-step, full-extent block path.
    x = jax.random.normal(k_x, (8, in_features), jnp.float32)
    y = jax.block_until_ready(multivar_reg_forward(x, weight, bias))
    y_ref = x @ weight.T + bias
    assert y.shape == (8, 1)
    assert jnp.allclose(y, y_ref, atol=1e-5, rtol=1e-5)

    # 2) Ragged multi-step grid: N=2125 -> 17 row-blocks, tile_rows=8 ->
    #    3 grid steps with a ragged last block (exercises cdiv + OOB masking).
    x2 = jax.random.normal(k_x2, (2125, in_features), jnp.float32)
    y2 = jax.block_until_ready(multivar_reg_forward(x2, weight, bias, tile_rows=8))
    y2_ref = x2 @ weight.T + bias
    assert y2.shape == (2125, 1)
    assert jnp.allclose(y2, y2_ref, atol=1e-5, rtol=1e-5)

    # 3) SoA fast path (features-first (3, 256)): no transpose, no padding.
    x3 = jax.random.normal(k_x3, (in_features, 256), jnp.float32)
    y3 = jax.block_until_ready(multivar_reg_forward_soa(x3, weight, bias))
    y3_ref = x3.T @ weight.T + bias
    assert y3.shape == (256, 1)
    assert jnp.allclose(y3, y3_ref, atol=1e-5, rtol=1e-5)

    # 4) Optional bf16 input path (kernel upcasts to f32 for the FMAs).
    x4 = jax.random.normal(k_x4, (300, in_features), jnp.float32).astype(jnp.bfloat16)
    y4 = jax.block_until_ready(multivar_reg_forward(x4, weight, bias))
    y4_ref = x4.astype(jnp.float32) @ weight.T + bias
    assert y4.shape == (300, 1)
    assert jnp.allclose(y4, y4_ref, atol=1e-5, rtol=1e-5)

    print("KERNEL_OK")
</pallas_src>

<mosaic_0001>
module attributes {stable_mosaic.version = 11 : i64} {
  func.func @_linear_kernel(%arg0: i32, %arg1: memref<4xf32, #tpu.memory_space<smem>>, %arg2: memref<3x1x128xf32, #tpu.memory_space<vmem>>, %arg3: memref<1x128xf32, #tpu.memory_space<vmem>>) attributes {dimension_semantics = [#tpu.dimension_semantics<parallel>], iteration_bounds = array<i64: 1>, scalar_prefetch = 0 : i64, scratch_operands = 0 : i64, tpu.core_type = #tpu.core_type<tc>, window_params = [{transform_indices = @transform_0, window_bounds = array<i64: 4>}, {transform_indices = @transform_1, window_bounds = array<i64: 3, 1, 128>}, {transform_indices = @transform_2, window_bounds = array<i64: 1, 128>}]} {
    %c0 = arith.constant 0 : index
    %0 = memref.load %arg1[%c0] : memref<4xf32, #tpu.memory_space<smem>>
    %c1 = arith.constant 1 : index
    %1 = memref.load %arg1[%c1] : memref<4xf32, #tpu.memory_space<smem>>
    %c2 = arith.constant 2 : index
    %2 = memref.load %arg1[%c2] : memref<4xf32, #tpu.memory_space<smem>>
    %c3 = arith.constant 3 : index
    %3 = memref.load %arg1[%c3] : memref<4xf32, #tpu.memory_space<smem>>
    %c0_0 = arith.constant 0 : index
    %c0_1 = arith.constant 0 : index
    %c0_2 = arith.constant 0 : index
    %4 = vector.load %arg2[%c0_0, %c0_1, %c0_2] : memref<3x1x128xf32, #tpu.memory_space<vmem>>, vector<1x1x128xf32>
    %5 = vector.shape_cast %4 : vector<1x1x128xf32> to vector<1x128xf32>
    %c1_3 = arith.constant 1 : index
    %c0_4 = arith.constant 0 : index
    %c0_5 = arith.constant 0 : index
    %6 = vector.load %arg2[%c1_3, %c0_4, %c0_5] : memref<3x1x128xf32, #tpu.memory_space<vmem>>, vector<1x1x128xf32>
    %7 = vector.shape_cast %6 : vector<1x1x128xf32> to vector<1x128xf32>
    %c2_6 = arith.constant 2 : index
    %c0_7 = arith.constant 0 : index
    %c0_8 = arith.constant 0 : index
    %8 = vector.load %arg2[%c2_6, %c0_7, %c0_8] : memref<3x1x128xf32, #tpu.memory_space<vmem>>, vector<1x1x128xf32>
    %9 = vector.shape_cast %8 : vector<1x1x128xf32> to vector<1x128xf32>
    %10 = vector.broadcast %0 : f32 to vector<1x128xf32>
    %11 = arith.mulf %10, %5 : vector<1x128xf32>
    %12 = vector.broadcast %1 : f32 to vector<1x128xf32>
    %13 = arith.mulf %12, %7 : vector<1x128xf32>
    %14 = arith.addf %11, %13 : vector<1x128xf32>
    %15 = vector.broadcast %2 : f32 to vector<1x128xf32>
    %16 = arith.mulf %15, %9 : vector<1x128xf32>
    %17 = arith.addf %14, %16 : vector<1x128xf32>
    %18 = vector.broadcast %3 : f32 to vector<1x128xf32>
    %19 = arith.addf %17, %18 : vector<1x128xf32>
    %c0_9 = arith.constant 0 : index
    %c0_10 = arith.constant 0 : index
    %20 = vector.load %arg3[%c0_9, %c0_10] : memref<1x128xf32, #tpu.memory_space<vmem>>, vector<1x128xf32>
    tpu.vector_store %arg3[%c0_9, %c0_10], %19 {strides = array<i32>} : memref<1x128xf32, #tpu.memory_space<vmem>>, vector<1x128xf32>,
    return
  }
  func.func @transform_0(%arg0: i32) -> i32 {
    %c0_i32 = arith.constant 0 : i32
    %c0_i32_0 = arith.constant 0 : i32
    return %c0_i32 : i32
  }
  func.func @transform_1(%arg0: i32) -> (i32, i32, i32) {
    %c0_i32 = arith.constant 0 : i32
    %c0_i32_0 = arith.constant 0 : i32
    %c0_i32_1 = arith.constant 0 : i32
    return %c0_i32, %arg0, %c0_i32_0 : i32, i32, i32
  }
  func.func @transform_2(%arg0: i32) -> (i32, i32) {
    %c0_i32 = arith.constant 0 : i32
    %c0_i32_0 = arith.constant 0 : i32
    return %arg0, %c0_i32 : i32, i32
  }
}

</mosaic_0001>

<bundles_post_ra>
// kernel: tpu_custom_call.1
= control target key start
LH: loop header
LB: loop body
LE: loop exit
PB: predicated region body
PF: predicated region fallthrough
CT: control target
= control target key end

     0   :  { %7 = vsyncpa [#allocation4], 0  ;;  %s151_s0 = inlined_call_operand.hbm [shape: f32[4], index: 0, kind: input, shape index: {}]   ;;  %s152_s1 = inlined_call_operand.vmem [shape: f32[3,1,128], index: 1, kind: input, shape index: {}]   ;;  %s153_s2 = inlined_call_operand.hbm [shape: f32[1,128], index: 2, kind: output, shape index: {}]  }
   0x1   :  { %8 = vsyncpa [#allocation3], 0  ;;  %s65_s11 = scalar_lea.hbm %s151_s0, 16 }
   0x2   :  { %p66_p0 = scmp.ne.s32.totalorder %s151_s0, %s65_s11  ;;  %p69_p1 = scmp.lt.u32.totalorder %s65_s11, %s151_s0 }
   0x4   :  { %p71_p2 = pnand %p69_p1, %p66_p0 }
   0x6   :  { %74 = shalt.err (!%p71_p2)
}
   0x7   :  { %s101_s16 = smov [#allocation2]  }
   0x8   :  { %16 = dma.hbm_to_smem %s151_s0, 16, %s101_s16, [#allocation4]  }
   0x9   :  { %97 = dma.done.wait [#allocation4], 16  }
   0xa   :  { %98 = vsyncadd [#allocation4], 4294967280 }
   0xb   :  { %22 = sfence }
   0xc   :  { %s23_s19 = sld [smem:[#allocation2]]  ;;  %s58_s20 = sld [smem:[#allocation2 + $0x1]]  ;;  %v27_v0 = vld [vmem:[%s152_s1] sm:$0x1]  ;;  %v61_v1 = vld [vmem:[%s152_s1 + $0x1] sm:$0x1] }
   0xd   :  { %s59_s21 = sld [smem:[#allocation2 + $0x2]]  ;;  %s60_s22 = sld [smem:[#allocation2 + $0x3]]  ;;  %v62_v2 = vld [vmem:[%s152_s1 + $0x2] sm:$0x1] }
   0xe   :  { %s102_s0 = smov [#allocation5]  }
   0xf   :  { %s49_s29 = sshll.u32 %s102_s0, 4  ;;  %s50_s29 = int_to_ptr.vmem [resolvable:$true] %s49_s29 }
  0x10   :  { %s75_s30 = scalar_lea.vmem %s50_s29, 16  ;;  %s79_s3 = scalar_lea.vmem %s50_s29, 32 }
  0x11   :  { %p76_p3 = scmp.ne.s32.totalorder %s50_s29, %s75_s30  ;;  %p80_p4 = scmp.lt.s32.totalorder %s50_s29, %s50_s29 }
  0x12   :  { %v32_v3 = vstv %s23_s19  ;;  %v34_v4 = vstv %s58_s20  ;;  %p81_p5 = scmp.lt.s32.totalorder %s79_s3, %s75_s30 }
  0x13   :  { %v33_v5 = vmul.f32 %v32_v3, %v27_v0  ;;  %v35_v6 = vmul.f32 %v61_v1, %v34_v4  ;;  %v37_v7 = vstv %s59_s21  ;;  %v40_v10 = vstv %s60_s22 }
  0x14   :  { %v38_v8 = vmul.f32 %v62_v2, %v37_v7  ;;  %p82_p6 = por %p81_p5, %p80_p4 }
  0x15   :  { %v36_v9 = vadd.f32 %v35_v6, %v33_v5 }
  0x16   :  { %p83_p7 = pnand %p82_p6, %p76_p3 }
  0x17   :  { %v39_v11 = vadd.f32 %v38_v8, %v36_v9 }
  0x19   :  { %v41_v12 = vadd.f32 %v40_v10, %v39_v11 }
  0x1b   :  { %42 = vst [vmem:[#allocation5] sm:$0x1] %v41_v12 }
  0x1c   :  { %86 = shalt.err (!%p83_p7)
}
  0x1d   :  { %s87_s5 = scalar_lea.hbm %s153_s2, 16 }
  0x1e   :  { %p88_p8 = scmp.ne.s32.totalorder %s153_s2, %s87_s5  ;;  %p91_p9 = scmp.lt.u32.totalorder %s87_s5, %s153_s2 }
  0x20   :  { %p93_p10 = pnand %p91_p9, %p88_p8 }
  0x22   :  { %96 = shalt.err (!%p93_p10)
}
  0x23   :  { %52 = dma.vmem_to_hbm [thread:$0]  %s50_s29, 16, %s153_s2, [#allocation3]  }
  0x24   :  { %99 = dma.done.wait [#allocation3], 16  }
  0x25   :  { %100 = vsyncadd [#allocation3], 4294967280 }
  0x26   :  { %56 = vsyncpa [#allocation3], 1 }
  0x27   :  { %57 = vsyncpa [#allocation4], 1 }

</bundles_post_ra>
